<compile_context>
chip_gen: v7x
topology: tpu7x:2x2x1
jax: 0.10.0
libtpu: 0.0.40
codegen_flags: <defaults>
</compile_context>

<pallas_src>
import math

import numpy as np
import jax
import jax.numpy as jnp
from jax.experimental import pallas as pl
from jax.experimental.pallas import tpu as pltpu

# ----------------------------- module constants -----------------------------
N_ANCILLA = 2
N_SYSTEM = 2
NUM_LAYERS = 2
TOTAL_QUBITS = N_SYSTEM + N_ANCILLA        # 4
DIM = 2 ** TOTAL_QUBITS                    # 16
SYS_DIM = 2 ** N_SYSTEM                    # 4
ANC_DIM = 2 ** N_ANCILLA                   # 4
MEASUREMENT_QUBIT = N_SYSTEM - 1           # wire 1 (PennyLane wire 0 = MSB)
OUT_W = 8                                  # [h_next(4) | <Z>(1) | zero pad(3)]
KRON_NORM_FIX = float(np.sqrt(SYS_DIM))    # ||proj16||^2 == SYS_DIM * ||proj4||^2


# ----------------- host-side circuit-unitary construction (glue) -------------
def _ry(theta):
    c, s = np.cos(theta / 2.0), np.sin(theta / 2.0)
    return np.array([[c, -s], [s, c]], dtype=np.float64)


def _kron_all(mats):
    out = mats[0]
    for m in mats[1:]:
        out = np.kron(out, m)
    return out


def _cnot(control, target, n):
    dim = 2 ** n
    M = np.zeros((dim, dim), dtype=np.float64)
    for i in range(dim):
        bc = (i >> (n - 1 - control)) & 1
        j = i ^ (bc << (n - 1 - target))
        M[j, i] = 1.0
    return M


def _basic_entangler_unitary(weights, n):
    """qml.BasicEntanglerLayers(weights, rotation=RY) as a real (2^n, 2^n) matrix."""
    dim = 2 ** n
    U = np.eye(dim, dtype=np.float64)
    for layer in range(weights.shape[0]):
        ry_layer = _kron_all([_ry(float(weights[layer, q])) for q in range(n)])
        U = ry_layer @ U
        if n == 2:
            U = _cnot(0, 1, n) @ U
        else:
            for q in range(n):                       # closed CNOT ring
                U = _cnot(q, (q + 1) % n, n) @ U
    return U


def build_circuit_unitary(U_params, Udagger_params):
    """entangling_unitary(U_params) followed by disentangling_unitary(Udagger_params).

    Note: the module's "disentangling" unitary only flips layer order of its
    params (not a true adjoint); reproduced faithfully here.
    """
    U_ent = _basic_entangler_unitary(np.asarray(U_params, dtype=np.float64), TOTAL_QUBITS)
    U_dis = _basic_entangler_unitary(np.asarray(Udagger_params, dtype=np.float64)[::-1],
                                     TOTAL_QUBITS)
    return U_dis @ U_ent


def build_qlstm_operands(W_in, b_in, U_params, Udagger_params):
    """Build the device-resident constant operands ONCE (hoisted off the hot path)."""
    U_total = build_circuit_unitary(np.asarray(U_params), np.asarray(Udagger_params))

    # EA fold: kron(inp, h)[i*ANC + j] = inp[i]*h[j]  ->  proj16[i*ANC+j] = x*W[i] + b[i]
    w16 = np.repeat(np.asarray(W_in, np.float32).reshape(SYS_DIM), ANC_DIM).reshape(1, DIM)
    b16 = np.repeat(np.asarray(b_in, np.float32).reshape(SYS_DIM), ANC_DIM).reshape(1, DIM)

    # Fused epilogue matrix MZ (16, 8):
    #   cols 0..3: diag of reduced density matrix on ancilla wires (sum over system idx)
    #   col 4    : PauliZ eigenvalues on wire MEASUREMENT_QUBIT (wire 0 is MSB)
    #   cols 5..7: zero padding (keeps one lane-contiguous output store per step)
    MZ = np.zeros((DIM, OUT_W), dtype=np.float32)
    for k in range(DIM):
        MZ[k, k % ANC_DIM] = 1.0
    shift = TOTAL_QUBITS - 1 - MEASUREMENT_QUBIT
    MZ[:, ANC_DIM] = [1.0 - 2.0 * ((k >> shift) & 1) for k in range(DIM)]

    UT = np.asarray(U_total.T, np.float32)           # psi_row = joint_row @ U^T
    return (jnp.asarray(w16), jnp.asarray(b16), jnp.asarray(UT), jnp.asarray(MZ))


# --------------------------------- kernel -----------------------------------
def qlstm_seq_kernel(x_ref, h0_ref, w16_ref, b16_ref, ut_ref, mz_ref,
                     out_ref, h_scr):
    # Recurrent state lives in VMEM scratch, carried across the time grid axis;
    # (re)initialize at the first step of each batch block.
    @pl.when(pl.program_id(1) == 0)
    def _():
        h_scr[...] = h0_ref[...]

    # input_proj (Linear(1,4)) with the kron-expansion folded into the weights:
    # proj16[b, i*ANC_DIM + j] = x[b]*W[i] + bias[i]
    proj16 = x_ref[...] * w16_ref[...] + b16_ref[...]                 # (Bt, 16)

    # torch quirk: input_state / norm(input_state + 1e-12); on the replicated
    # 16-wide layout ||proj16 + eps||^2 == SYS_DIM * ||proj4 + eps||^2.
    s = jnp.sum((proj16 + 1e-12) ** 2, axis=-1, keepdims=True)        # (Bt, 1)
    inp16 = proj16 * (KRON_NORM_FIX * jax.lax.rsqrt(s))

    # joint = kron(input_state, h_prev): replicate h along lanes (no MXU op)
    h_rep = jnp.concatenate([h_scr[...]] * SYS_DIM, axis=-1)          # (Bt, 16)
    joint = inp16 * h_rep
    # AmplitudeEmbedding(normalize=True)
    inv = jax.lax.rsqrt(jnp.sum(joint * joint, axis=-1, keepdims=True))
    joint = joint * inv

    # circuit evolution (real RY/CNOT circuit): psi_row = joint_row @ U^T
    psi = jnp.dot(joint, ut_ref[...],
                  precision=jax.lax.Precision.HIGHEST,
                  preferred_element_type=jnp.float32)                 # (Bt, 16)
    probs = psi * psi

    # fused epilogue: [diag(rho_ancilla) | <Z(wire 1)> | 0-pad]
    r = jnp.dot(probs, mz_ref[...],
                precision=jax.lax.Precision.HIGHEST,
                preferred_element_type=jnp.float32)                   # (Bt, 8)
    h_scr[...] = r[:, :ANC_DIM]
    out_ref[...] = r


# -------------------------------- wrapper ------------------------------------
def quantum_lstm_sequence(xs, h0, operands):
    """Run the whole recurrence in one pallas_call.

    xs: (T, B, 1) f32 inputs, h0: (B, ANC_DIM) f32 initial hidden state.
    Returns (h_seq: (T, B, ANC_DIM), z_seq: (T, B)); the module's single-step
    forward is the T=1, B=1 special case (h_next = h_seq[-1]).
    """
    w16, b16, ut, mz = operands
    T, B, _ = xs.shape

    # Pad batch to a multiple of 8 so blocks fill vreg sublanes.
    pad = (-B) % 8
    if pad:
        xs = jnp.concatenate([xs, jnp.zeros((T, pad, 1), xs.dtype)], axis=1)
        h0 = jnp.concatenate(
            [h0, jnp.full((pad, ANC_DIM), 1.0 / ANC_DIM, h0.dtype)], axis=0)
    Bp = B + pad
    b_tile = math.gcd(Bp, 128)          # <=128 rows per block (matches v5e MXU height)
    nb = Bp // b_tile

    grid_spec = pltpu.PrefetchScalarGridSpec(
        num_scalar_prefetch=0,
        grid=(nb, T),                   # batch blocks (parallel), time (carried)
        in_specs=[
            pl.BlockSpec((None, b_tile, 1), lambda b, t: (t, b, 0)),   # x_t
            pl.BlockSpec((b_tile, ANC_DIM), lambda b, t: (b, 0)),      # h0
            pl.BlockSpec((1, DIM), lambda b, t: (0, 0)),               # w16 (const)
            pl.BlockSpec((1, DIM), lambda b, t: (0, 0)),               # b16 (const)
            pl.BlockSpec((DIM, DIM), lambda b, t: (0, 0)),             # U^T  (const)
            pl.BlockSpec((DIM, OUT_W), lambda b, t: (0, 0)),           # MZ   (const)
        ],
        out_specs=pl.BlockSpec((None, b_tile, OUT_W), lambda b, t: (t, b, 0)),
        scratch_shapes=[pltpu.VMEM((b_tile, ANC_DIM), jnp.float32)],   # carried h
    )

    out = pl.pallas_call(
        qlstm_seq_kernel,
        out_shape=jax.ShapeDtypeStruct((T, Bp, OUT_W), jnp.float32),
        grid_spec=grid_spec,
        compiler_params=pltpu.CompilerParams(
            dimension_semantics=("parallel", "arbitrary")),
    )(xs, h0, w16, b16, ut, mz)

    out = out[:, :B, :]
    return out[..., :ANC_DIM], out[..., ANC_DIM]


# ----------------------------- plain reference (float64) ---------------------
def reference_sequence(xs, h0, W_in, b_in, U_params, Udagger_params):
    U = build_circuit_unitary(np.asarray(U_params), np.asarray(Udagger_params))  # f64
    xs = np.asarray(xs, np.float64)
    h = np.asarray(h0, np.float64).copy()
    W = np.asarray(W_in, np.float64).reshape(SYS_DIM)
    bb = np.asarray(b_in, np.float64).reshape(SYS_DIM)
    T, B, _ = xs.shape
    shift = TOTAL_QUBITS - 1 - MEASUREMENT_QUBIT
    zvals = 1.0 - 2.0 * np.array([(k >> shift) & 1 for k in range(DIM)], np.float64)
    h_seq = np.zeros((T, B, ANC_DIM), np.float64)
    z_seq = np.zeros((T, B), np.float64)
    for t in range(T):
        for bidx in range(B):
            proj = xs[t, bidx, 0] * W + bb
            inp = proj / np.linalg.norm(proj + 1e-12)
            joint = np.kron(inp, h[bidx])
            joint = joint / np.linalg.norm(joint)
            psi = U @ joint
            probs = psi ** 2
            hn = probs.reshape(SYS_DIM, ANC_DIM).sum(axis=0)
            h_seq[t, bidx] = hn
            z_seq[t, bidx] = np.sum(probs * zvals)
            h[bidx] = hn
    return h_seq, z_seq


# ----------------------------------- main ------------------------------------
if __name__ == "__main__":
    key = jax.random.PRNGKey(0)
    k1, k2, k3, k4, k5, k6 = jax.random.split(key, 6)

    # deterministic synthetic parameters (shapes from the module's __init__)
    U_params = jax.random.uniform(k1, (NUM_LAYERS, TOTAL_QUBITS), jnp.float32)        # torch.rand
    Udagger_params = jax.random.uniform(k2, (NUM_LAYERS, TOTAL_QUBITS), jnp.float32)  # torch.rand
    W_in = jax.random.uniform(k3, (SYS_DIM, 1), jnp.float32, minval=-1.0, maxval=1.0)  # Linear(1,4).weight
    b_in = jax.random.uniform(k4, (SYS_DIM,), jnp.float32, minval=-1.0, maxval=1.0)    # Linear(1,4).bias
    # TODO(synk): output_proj (Linear(4,1)) exists in __init__ but is unused in forward; omitted.

    # example inputs: T time steps, B independent sequences
    T, B = 8, 8
    xs = jax.random.normal(k5, (T, B, 1), jnp.float32)
    h0 = jax.random.uniform(k6, (B, ANC_DIM), jnp.float32)
    h0 = h0 / jnp.sum(h0, axis=-1, keepdims=True)   # prob-like hidden state (diag of a density matrix)

    operands = build_qlstm_operands(W_in, b_in, U_params, Udagger_params)  # built ONCE
    run = jax.jit(quantum_lstm_sequence)

    h_seq, z_seq = run(xs, h0, operands)
    h_seq = jax.block_until_ready(h_seq)
    z_seq = jax.block_until_ready(z_seq)

    h_ref, z_ref = reference_sequence(xs, h0, W_in, b_in, U_params, Udagger_params)
    assert np.allclose(np.asarray(h_seq), h_ref, atol=5e-4), (
        "h mismatch", np.max(np.abs(np.asarray(h_seq) - h_ref)))
    assert np.allclose(np.asarray(z_seq), z_ref, atol=5e-4), (
        "z mismatch", np.max(np.abs(np.asarray(z_seq) - z_ref)))
    assert np.allclose(np.asarray(h_seq).sum(axis=-1), 1.0, atol=1e-3)  # trace(rho) == 1 each step

    print("KERNEL_OK")
</pallas_src>

<mosaic_0001>
module attributes {stable_mosaic.version = 11 : i64} {
  func.func @qlstm_seq_kernel(%arg0: i32, %arg1: i32, %arg2: memref<1x8x1xf32, #tpu.memory_space<vmem>>, %arg3: memref<8x4xf32, #tpu.memory_space<vmem>>, %arg4: memref<1x16xf32, #tpu.memory_space<vmem>>, %arg5: memref<1x16xf32, #tpu.memory_space<vmem>>, %arg6: memref<16x16xf32, #tpu.memory_space<vmem>>, %arg7: memref<16x8xf32, #tpu.memory_space<vmem>>, %arg8: memref<1x8x8xf32, #tpu.memory_space<vmem>>, %arg9: memref<8x4xf32, #tpu.memory_space<vmem>>) attributes {dimension_semantics = [#tpu.dimension_semantics<parallel>, #tpu.dimension_semantics<arbitrary>], iteration_bounds = array<i64: 1, 8>, scalar_prefetch = 0 : i64, scratch_operands = 1 : i64, tpu.core_type = #tpu.core_type<tc>, window_params = [{transform_indices = @transform_0, window_bounds = array<i64: 1, 8, 1>}, {transform_indices = @transform_1, window_bounds = array<i64: 8, 4>}, {pipeline_mode = #tpu.pipeline_mode<synchronous>, transform_indices = @transform_2, window_bounds = array<i64: 1, 16>}, {pipeline_mode = #tpu.pipeline_mode<synchronous>, transform_indices = @transform_3, window_bounds = array<i64: 1, 16>}, {pipeline_mode = #tpu.pipeline_mode<synchronous>, transform_indices = @transform_4, window_bounds = array<i64: 16, 16>}, {pipeline_mode = #tpu.pipeline_mode<synchronous>, transform_indices = @transform_5, window_bounds = array<i64: 16, 8>}, {transform_indices = @transform_6, window_bounds = array<i64: 1, 8, 8>}]} {
    %c0_i32 = arith.constant 0 : i32
    %0 = arith.cmpi eq, %arg1, %c0_i32 : i32
    %1 = arith.extui %0 : i1 to i32
    %c0_i32_0 = arith.constant 0 : i32
    %2 = arith.cmpi ne, %1, %c0_i32_0 : i32
    scf.if %2 {
      %c0_23 = arith.constant 0 : index
      %c0_24 = arith.constant 0 : index
      %41 = vector.load %arg3[%c0_23, %c0_24] : memref<8x4xf32, #tpu.memory_space<vmem>>, vector<8x4xf32>
      %c0_25 = arith.constant 0 : index
      %c0_26 = arith.constant 0 : index
      %42 = vector.load %arg9[%c0_25, %c0_26] : memref<8x4xf32, #tpu.memory_space<vmem>>, vector<8x4xf32>
      tpu.vector_store %arg9[%c0_25, %c0_26], %41 {strides = array<i32>} : memref<8x4xf32, #tpu.memory_space<vmem>>, vector<8x4xf32>,
    } else {
    }
    %c0 = arith.constant 0 : index
    %c0_1 = arith.constant 0 : index
    %c0_2 = arith.constant 0 : index
    %3 = vector.load %arg2[%c0, %c0_1, %c0_2] : memref<1x8x1xf32, #tpu.memory_space<vmem>>, vector<1x8x1xf32>
    %4 = vector.shape_cast %3 : vector<1x8x1xf32> to vector<8x1xf32>
    %c0_3 = arith.constant 0 : index
    %c0_4 = arith.constant 0 : index
    %5 = vector.load %arg4[%c0_3, %c0_4] : memref<1x16xf32, #tpu.memory_space<vmem>>, vector<1x16xf32>
    %6 = vector.broadcast %4 : vector<8x1xf32> to vector<8x16xf32>
    %7 = vector.broadcast %5 : vector<1x16xf32> to vector<8x16xf32>
    %8 = arith.mulf %6, %7 : vector<8x16xf32>
    %c0_5 = arith.constant 0 : index
    %c0_6 = arith.constant 0 : index
    %9 = vector.load %arg5[%c0_5, %c0_6] : memref<1x16xf32, #tpu.memory_space<vmem>>, vector<1x16xf32>
    %10 = vector.broadcast %9 : vector<1x16xf32> to vector<8x16xf32>
    %11 = arith.addf %8, %10 : vector<8x16xf32>
    %cst = arith.constant 9.99999996E-13 : f32
    %12 = vector.broadcast %cst : f32 to vector<8x16xf32>
    %13 = arith.addf %11, %12 : vector<8x16xf32>
    %14 = arith.mulf %13, %13 : vector<8x16xf32>
    %cst_7 = arith.constant dense<0.000000e+00> : vector<8xf32>
    %15 = vector.multi_reduction <add>, %14, %cst_7 [1] : vector<8x16xf32> to vector<8xf32>
    %16 = vector.shape_cast %15 : vector<8xf32> to vector<8x1xf32>
    %17 = math.rsqrt %16 : vector<8x1xf32>
    %cst_8 = arith.constant 2.000000e+00 : f32
    %18 = vector.broadcast %cst_8 : f32 to vector<8x1xf32>
    %19 = arith.mulf %18, %17 : vector<8x1xf32>
    %20 = vector.broadcast %19 : vector<8x1xf32> to vector<8x16xf32>
    %21 = arith.mulf %11, %20 : vector<8x16xf32>
    %c0_9 = arith.constant 0 : index
    %c0_10 = arith.constant 0 : index
    %22 = vector.load %arg9[%c0_9, %c0_10] : memref<8x4xf32, #tpu.memory_space<vmem>>, vector<8x4xf32>
    %23 = tpu.concatenate %22, %22, %22, %22 in 1 : vector<8x4xf32>, vector<8x4xf32>, vector<8x4xf32>, vector<8x4xf32> -> vector<8x16xf32>
    %24 = arith.mulf %21, %23 : vector<8x16xf32>
    %25 = arith.mulf %24, %24 : vector<8x16xf32>
    %cst_11 = arith.constant dense<0.000000e+00> : vector<8xf32>
    %26 = vector.multi_reduction <add>, %25, %cst_11 [1] : vector<8x16xf32> to vector<8xf32>
    %27 = vector.shape_cast %26 : vector<8xf32> to vector<8x1xf32>
    %28 = math.rsqrt %27 : vector<8x1xf32>
    %29 = vector.broadcast %28 : vector<8x1xf32> to vector<8x16xf32>
    %30 = arith.mulf %24, %29 : vector<8x16xf32>
    %c0_12 = arith.constant 0 : index
    %c0_13 = arith.constant 0 : index
    %31 = vector.load %arg6[%c0_12, %c0_13] : memref<16x16xf32, #tpu.memory_space<vmem>>, vector<16x16xf32>
    %cst_14 = arith.constant dense<0.000000e+00> : vector<8x16xf32>
    %32 = tpu.matmul %30, %31, %cst_14 {dimension_numbers = #tpu.dot_dimension_numbers<[1], [0], [0], [1], [0, 0, 1, 1], [], []>, precision = #tpu.contract_precision<fp32>} : vector<8x16xf32>, vector<16x16xf32>, vector<8x16xf32> -> vector<8x16xf32>
    %33 = arith.mulf %32, %32 : vector<8x16xf32>
    %c0_15 = arith.constant 0 : index
    %c0_16 = arith.constant 0 : index
    %34 = vector.load %arg7[%c0_15, %c0_16] : memref<16x8xf32, #tpu.memory_space<vmem>>, vector<16x8xf32>
    %cst_17 = arith.constant dense<0.000000e+00> : vector<8x8xf32>
    %35 = tpu.matmul %33, %34, %cst_17 {dimension_numbers = #tpu.dot_dimension_numbers<[1], [0], [0], [1], [0, 0, 1, 1], [], []>, precision = #tpu.contract_precision<fp32>} : vector<8x16xf32>, vector<16x8xf32>, vector<8x8xf32> -> vector<8x8xf32>
    %36 = vector.extract_strided_slice %35 {offsets = [0, 0], sizes = [8, 4], strides = [1, 1]} : vector<8x8xf32> to vector<8x4xf32>
    %c0_18 = arith.constant 0 : index
    %c0_19 = arith.constant 0 : index
    %37 = vector.load %arg9[%c0_18, %c0_19] : memref<8x4xf32, #tpu.memory_space<vmem>>, vector<8x4xf32>
    tpu.vector_store %arg9[%c0_18, %c0_19], %36 {strides = array<i32>} : memref<8x4xf32, #tpu.memory_space<vmem>>, vector<8x4xf32>,
    %c0_20 = arith.constant 0 : index
    %c0_21 = arith.constant 0 : index
    %c0_22 = arith.constant 0 : index
    %38 = vector.load %arg8[%c0_20, %c0_21, %c0_22] : memref<1x8x8xf32, #tpu.memory_space<vmem>>, vector<1x8x8xf32>
    %39 = vector.shape_cast %38 : vector<1x8x8xf32> to vector<8x8xf32>
    %40 = vector.shape_cast %35 : vector<8x8xf32> to vector<1x8x8xf32>
    tpu.vector_store %arg8[%c0_20, %c0_21, %c0_22], %40 {strides = array<i32>} : memref<1x8x8xf32, #tpu.memory_space<vmem>>, vector<1x8x8xf32>,
    return
  }
  func.func @transform_0(%arg0: i32, %arg1: i32) -> (i32, i32, i32) {
    %c0_i32 = arith.constant 0 : i32
    %c0_i32_0 = arith.constant 0 : i32
    return %arg1, %arg0, %c0_i32 : i32, i32, i32
  }
  func.func @transform_1(%arg0: i32, %arg1: i32) -> (i32, i32) {
    %c0_i32 = arith.constant 0 : i32
    %c0_i32_0 = arith.constant 0 : i32
    return %arg0, %c0_i32 : i32, i32
  }
  func.func @transform_2(%arg0: i32, %arg1: i32) -> (i32, i32) {
    %c0_i32 = arith.constant 0 : i32
    %c0_i32_0 = arith.constant 0 : i32
    %c0_i32_1 = arith.constant 0 : i32
    return %c0_i32, %c0_i32_0 : i32, i32
  }
  func.func @transform_3(%arg0: i32, %arg1: i32) -> (i32, i32) {
    %c0_i32 = arith.constant 0 : i32
    %c0_i32_0 = arith.constant 0 : i32
    %c0_i32_1 = arith.constant 0 : i32
    return %c0_i32, %c0_i32_0 : i32, i32
  }
  func.func @transform_4(%arg0: i32, %arg1: i32) -> (i32, i32) {
    %c0_i32 = arith.constant 0 : i32
    %c0_i32_0 = arith.constant 0 : i32
    %c0_i32_1 = arith.constant 0 : i32
    return %c0_i32, %c0_i32_0 : i32, i32
  }
  func.func @transform_5(%arg0: i32, %arg1: i32) -> (i32, i32) {
    %c0_i32 = arith.constant 0 : i32
    %c0_i32_0 = arith.constant 0 : i32
    %c0_i32_1 = arith.constant 0 : i32
    return %c0_i32, %c0_i32_0 : i32, i32
  }
  func.func @transform_6(%arg0: i32, %arg1: i32) -> (i32, i32, i32) {
    %c0_i32 = arith.constant 0 : i32
    %c0_i32_0 = arith.constant 0 : i32
    return %arg1, %arg0, %c0_i32 : i32, i32, i32
  }
}

</mosaic_0001>

<bundles_post_ra>
// kernel: quantum_lstm_sequence.1
= control target key start
LH: loop header
LB: loop body
LE: loop exit
PB: predicated region body
PF: predicated region fallthrough
CT: control target
= control target key end

     0   :  { %s1669_s21 = smov 0   ;;  %s1671_s22 = smov 0   ;;  %s1770_s0 = inlined_call_operand.vmem [shape: f32[8,8,1], index: 0, kind: input, shape index: {}]   ;;  %s1771_s1 = inlined_call_operand.vmem [shape: f32[8,4], index: 1, kind: input, shape index: {}]   ;;  %s1772_s2 = inlined_call_operand.vmem [shape: f32[1,16], index: 2, kind: input, shape index: {}]   ;;  %s1773_s3 = inlined_call_operand.vmem [shape: f32[1,16], index: 3, kind: input, shape index: {}]   ;;  %s1774_s4 = inlined_call_operand.vmem [shape: f32[16,16], index: 4, kind: input, shape index: {}]   ;;  %s1775_s5 = inlined_call_operand.vmem [shape: f32[16,8], index: 5, kind: input, shape index: {}]   ;;  %s1776_s6 = inlined_call_operand.vmem [shape: f32[8,8,8], index: 6, kind: output, shape index: {}]  }
   0x1   :  { %s1673_s23 = smov 0  }
   0x2 LB: > { %s25_s24 = sadd.s32 1, %s1621_s22  ;;  %p1383_p0 = scmp.ge.s32.totalorder %s1625_s23, 1  ;;  %s1625_s23 = sphi %s1673_s23, %s16_s23   ;;  %s1621_s22 = sphi %s1671_s22, %s1778_s22   ;;  %s1617_s21 = sphi %s1669_s21, %s1777_s21  }
   0x3   : > { %p26_p1 = scmp.ge.s32.totalorder %s25_s24, 8  ;;  %p239_p2 = scmp.lt.s32.totalorder %s1625_s23, 9 }
   0x5   : > { %s1780_s24 = smov (%p26_p1, %s25_s24), 0  ;;  %p240_p3 = pnand %p1383_p0, %p239_p2 }
   0x6   : > { %p277_p4 = scmp.lt.s32.totalorder (!%p240_p3), %s1617_s21, 7  ;;  %p1386_p5 = scmp.ne.s32.totalorder (!%p240_p3), %s1617_s21, 0 }
   0x7   : > { %243 = sbr.rel (%p240_p3) target bundleno = 1008 (0x3f0), region = 44 }
   0xe   : > { %s278_s25 = scalar_select %p277_p4, %s1617_s21, 7 }
   0xf   : > { %298 = sbr.rel (%p1386_p5) target bundleno = 22 (0x16), region = 48  ;;  %v299_v0 = vld [vmem:[%s1771_s1] sm:$0xff] (!%p1386_p5)  ;;  %vm300_vm0 = vcmask (!%p1386_p5), 31744  }
  0x10   : > { %s1384_s26 = sshll.u32 %s278_s25, 3  ;;  %301 = vst.msk [vmem:[#allocation2] sm:$0xff] (!%p1386_p5), %vm300_vm0, %v299_v0 }
  0x11   : > { %s283_s29 = scalar_lea.vmem %s1770_s0, %s1384_s26  ;;  %s1693_s8 = scalar_lea.vmem %s1776_s6, %s1384_s26 }
  0x16 PF: > { %v302_v1 = vld [vmem:[%s283_s29] sm:$0xff]  ;;  %v1627_v2 = vmov 0   ;;  %s1628_s11 = smov 4   ;;  %s1629_s12 = smov 8   ;;  %vm326_vm1 = vcmask 130048   ;;  %vm344_vm2 = vcmask 31744  }
  0x17   : > { %1598 = vset.pattern.permute.xlu0 %v1627_v2  ;;  %v333_v3 = vld [vmem:[#allocation2] sm:$0xff]  ;;  %s1630_s13 = smov 12   ;;  %vm346_vm3 = vcmask 64512   ;;  %vm348_vm4 = vcmask 97280   ;;  %v358_v26 = vld [vmem:[%s1774_s4 + $0x8] sm:$0xff]  ;;  %v1631_v27 = vmov 0.0|0.0  }
  0x18   : > { %306 = vperm.xlu0 %1598, %v302_v1   ;;  %335 = vrot.lane.b32.xlu1 %v333_v3, %s1628_s11  ;;  %v1387_v4 = vld [vmem:[%s1772_s2] ss:$0 sm:$0xff]  ;;  %v366_v29 = vand.u32 4294901760, %v358_v26  ;;  %vm1632_vm5 = vmmov 0   ;;  %v1633_v30 = vmov 0.0   ;;  %v823_v53 = vld [vmem:[%s1775_s5 + $0x8] sm:$0xff] }
  0x19   : > { %v1388_v5 = vld [vmem:[%s1773_s3] ss:$0 sm:$0xff]  ;;  %1511 = vmatprep.subr.bf16.mxu0 %v1631_v27  ;;  %1431 = vmatprep.mubr.msk.f32.mxu0 %vm1632_vm5, %v1633_v30  ;;  %v831_v55 = vand.u32 4294901760, %v823_v53 }
  0x1a   : > { %v357_v25 = vld [vmem:[%s1774_s4] sm:$0xff]  ;;  %1529 = vmatprep.subr.bf16.mxu1 %v1631_v27  ;;  %1473 = vmatprep.mubr.msk.f32.mxu1 %vm1632_vm5, %v1633_v30  ;;  %v448_v33 = vsub.f32 %v358_v26, %v366_v29 }
  0x1b   : > { %v363_v28 = vand.u32 4294901760, %v357_v25  ;;  %v822_v52 = vld [vmem:[%s1775_s5] sm:$0xff]  ;;  %v913_v58 = vsub.f32 %v823_v53, %v831_v55 }
  0x1c   : > { %338 = vrot.lane.b32.xlu1 %v333_v3, %s1629_s12  ;;  %v449_v35 = vand.u32 4294901760, %v448_v33  ;;  %v828_v54 = vand.u32 4294901760, %v822_v52 }
  0x1d   : > { %v1512_v31 = vpack.c.bf16 %v366_v29, %v363_v28  ;;  %v441_v32 = vsub.f32 %v357_v25, %v363_v28  ;;  %v914_v60 = vand.u32 4294901760, %v913_v58 }
  0x1e   : > { %v450_v37 = vsub.f32 %v448_v33, %v449_v35  ;;  %v1530_v56 = vpack.c.bf16 %v831_v55, %v828_v54  ;;  %v906_v57 = vsub.f32 %v822_v52, %v828_v54 }
  0x1f   : > { %1513 = vmatpush3.bf16.msra.mxu0 %v1512_v31  ;;  %v442_v34 = vand.u32 4294901760, %v441_v32  ;;  %v1518_v41 = vpack.c.bf16 %v448_v33, %v441_v32  ;;  %v915_v62 = vsub.f32 %v913_v58, %v914_v60 }
  0x20   : > { %341 = vrot.lane.b32.xlu1 %v333_v3, %s1630_s13  ;;  %1514 = vmatprep.subr.bf16.mxu0 %v1631_v27  ;;  %v451_v39 = vand.u32 4294901760, %v450_v37  ;;  %v907_v59 = vand.u32 4294901760, %v906_v57  ;;  %v1536_v2 = vpack.c.bf16 %v913_v58, %v906_v57 }
  0x21   : > { %v443_v36 = vsub.f32 %v441_v32, %v442_v34  ;;  %v1524_v42 = vpack.c.bf16 %v449_v35, %v442_v34  ;;  %1531 = vmatpush3.bf16.msra.mxu1 %v1530_v56  ;;  %v916_v0 = vand.u32 4294901760, %v915_v62 }
  0x22   : > { %1532 = vmatprep.subr.bf16.mxu1 %v1631_v27  ;;  %v908_v61 = vsub.f32 %v906_v57, %v907_v59 }
  0x23   : > { %v444_v38 = vand.u32 4294901760, %v443_v36 }
  0x24   : > { %v909_v63 = vand.u32 4294901760, %v908_v61 }
  0x25   : > { %v1515_v40 = vpack.c.bf16 %v451_v39, %v444_v38 }
  0x26   : > { %v1533_v1 = vpack.c.bf16 %v916_v0, %v909_v63 }
  0x8a   : > { %v336_v12 = vpop.permute.xlu1 %335 }
  0x8b   : > { %v345_v15 = vsel %vm344_vm2, %v333_v3, %v336_v12  ;;  %v1542_v3 = vpack.c.bf16 %v914_v60, %v907_v59 }
  0x8e   : > { %v339_v14 = vpop.permute.xlu1 %338 }
  0x8f   : > { %v347_v18 = vsel %vm346_vm3, %v345_v15, %v339_v14 }
  0x92   : > { %v342_v19 = vpop.permute.xlu1 %341 }
  0x93   : > { %v349_v21 = vsel %vm348_vm4, %v347_v18, %v342_v19 }
  0x97   : > { %v307_v6 = vpop.permute.xlu0 %306 }
  0x98   : > { %v315_v7 = vmul.f32 %v1387_v4, %v307_v6 }
  0x9a   : > { %v323_v8 = vadd.f32 %v1388_v5, %v315_v7 }
  0x9c   : > { %v324_v9 = vadd.f32 1e-12, %v323_v8 }
  0x9e   : > { %v325_v10 = vmul.f32 %v324_v9, %v324_v9 }
  0xa0   : > { %v327_v11 = vsel %vm326_vm1, %v325_v10, 0.0 }
  0xa1   : > { %328 = vadd.xlane.f32.xlu0 %v327_v11 }
 0x12e   : > { %v329_v13 = vpop.xlane.xlu0 %328 }
 0x12f   : > { %1599 = vrsqrt.f32 %v329_v13 }
 0x139   : > { %v1600_v16 = vpop.eup %1599 }
 0x13a   : > { %v331_v17 = vmul.f32 2.0, %v1600_v16 }
 0x13c   : > { %v332_v20 = vmul.f32 %v331_v17, %v323_v8 }
 0x13e   : > { %v350_v22 = vmul.f32 %v349_v21, %v332_v20 }
 0x140   : > { %v351_v23 = vmul.f32 %v350_v22, %v350_v22 }
 0x142   : > { %v352_v24 = vsel %vm326_vm1, %v351_v23, 0.0 }
 0x143   : > { %353 = vadd.xlane.f32.xlu1 %v352_v24 }
 0x1d0   : > { %v354_v43 = vpop.xlane.xlu1 %353 }
 0x1d1   : > { %1601 = vrsqrt.f32 %v354_v43 }
 0x1db   : > { %v1602_v44 = vpop.eup %1601 }
 0x1dc   : > { %v356_v45 = vmul.f32 %v1602_v44, %v350_v22 }
 0x1de   : > { %v360_v46 = vsel %vm326_vm1, %v356_v45, 0 }
 0x1df   : > { %v429_v47 = vand.u32 4294901760, %v360_v46 }
 0x1e1   : > { %v430_v48 = vsub.f32 %v360_v46, %v429_v47 }
 0x1e3   : > { %v431_v49 = vand.u32 4294901760, %v430_v48 }
 0x1e5   : > { %v432_v50 = vsub.f32 %v430_v48, %v431_v49 }
 0x1e7   : > { %v433_v51 = vand.u32 4294901760, %v432_v50 }
 0x1e9   : > { %1432 = vmatmul.mubr.f32.vlgmr.msra.gmra.mrb[0].mxu0 %v433_v51 }
 0x1ea   : > { %1516 = vmatpush3.bf16.msra.mxu0 %v1515_v40  ;;  %1438 = vmatprep.mubr.msk.f32.mxu0 %vm1632_vm5, %v1633_v30 }
 0x1eb   : > { %1517 = vmatprep.subr.bf16.mxu0 %v1631_v27 }
 0x1f1   : > { %1439 = vmatmul.mubr.f32.vlgmr.msra.gmra.mrb[0].mxu0 %v429_v47 }
 0x1f2   : > { %1519 = vmatpush3.bf16.msra.mxu0 %v1518_v41  ;;  %1445 = vmatprep.mubr.msk.f32.mxu0 %vm1632_vm5, %v1633_v30 }
 0x1f3   : > { %1520 = vmatprep.subr.bf16.mxu0 %v1631_v27 }
 0x1f9   : > { %1446 = vmatmul.mubr.f32.vlgmr.msra.gmra.mrb[0].mxu0 %v430_v48 }
 0x1fa   : > { %1522 = vmatpush3.bf16.msra.mxu0 %v1512_v31  ;;  %1452 = vmatprep.mubr.msk.f32.mxu0 %vm1632_vm5, %v1633_v30 }
 0x1fb   : > { %1523 = vmatprep.subr.bf16.mxu0 %v1631_v27 }
 0x201   : > { %1453 = vmatmul.mubr.f32.vlgmr.msra.gmra.mrb[0].mxu0 %v431_v49 }
 0x202   : > { %1525 = vmatpush3.bf16.msra.mxu0 %v1524_v42  ;;  %1459 = vmatprep.mubr.msk.f32.mxu0 %vm1632_vm5, %v1633_v30 }
 0x203   : > { %1526 = vmatprep.subr.bf16.mxu0 %v1631_v27 }
 0x209   : > { %1460 = vmatmul.mubr.f32.vlgmr.msra.gmra.mrb[0].mxu0 %v429_v47 }
 0x20a   : > { %1528 = vmatpush3.bf16.msra.mxu0 %v1512_v31  ;;  %1466 = vmatprep.mubr.msk.f32.mxu0 %vm1632_vm5, %v1633_v30 }
 0x211   : > { %1467 = vmatmul.mubr.f32.vlgmr.msra.gmra.mrb[0].mxu0 %v429_v47 }
 0x2e4   : > { %v817_v4 = vpop.f32.mrb[0].mxu0 }
 0x2e5   : > { %v821_v5 = vmul.f32 %v817_v4, %v817_v4  ;;  %v1468_v6 = vpop.f32.mrb[1].mxu0 }
 0x2e7   : > { %v825_v7 = vsel %vm326_vm1, %v821_v5, 0 }
 0x2e8   : > { %v894_v8 = vand.u32 4294901760, %v825_v7 }
 0x2ea   : > { %v895_v9 = vsub.f32 %v825_v7, %v894_v8 }
 0x2ec   : > { %v896_v10 = vand.u32 4294901760, %v895_v9 }
 0x2ee   : > { %v897_v11 = vsub.f32 %v895_v9, %v896_v10 }
 0x2f0   : > { %v898_v12 = vand.u32 4294901760, %v897_v11 }
 0x2f2   : > { %1474 = vmatmul.mubr.f32.vlgmr.msra.gmra.mrb[0].mxu1 %v898_v12 }
 0x2f3   : > { %1534 = vmatpush3.bf16.msra.mxu1 %v1533_v1  ;;  %1480 = vmatprep.mubr.msk.f32.mxu1 %vm1632_vm5, %v1633_v30 }
 0x2f4   : > { %1535 = vmatprep.subr.bf16.mxu1 %v1631_v27 }
 0x2fa   : > { %1481 = vmatmul.mubr.f32.vlgmr.msra.gmra.mrb[0].mxu1 %v894_v8 }
 0x2fb   : > { %1537 = vmatpush3.bf16.msra.mxu1 %v1536_v2  ;;  %1487 = vmatprep.mubr.msk.f32.mxu1 %vm1632_vm5, %v1633_v30 }
 0x2fc   : > { %1538 = vmatprep.subr.bf16.mxu1 %v1631_v27 }
 0x302   : > { %1488 = vmatmul.mubr.f32.vlgmr.msra.gmra.mrb[0].mxu1 %v895_v9 }
 0x303   : > { %1540 = vmatpush3.bf16.msra.mxu1 %v1530_v56  ;;  %1494 = vmatprep.mubr.msk.f32.mxu1 %vm1632_vm5, %v1633_v30 }
 0x304   : > { %1541 = vmatprep.subr.bf16.mxu1 %v1631_v27 }
 0x30a   : > { %1495 = vmatmul.mubr.f32.vlgmr.msra.gmra.mrb[0].mxu1 %v896_v10 }
 0x30b   : > { %1543 = vmatpush3.bf16.msra.mxu1 %v1542_v3  ;;  %1501 = vmatprep.mubr.msk.f32.mxu1 %vm1632_vm5, %v1633_v30 }
 0x30c   : > { %1544 = vmatprep.subr.bf16.mxu1 %v1631_v27 }
 0x312   : > { %1502 = vmatmul.mubr.f32.vlgmr.msra.gmra.mrb[0].mxu1 %v894_v8 }
 0x313   : > { %1546 = vmatpush3.bf16.msra.mxu1 %v1530_v56  ;;  %1508 = vmatprep.mubr.msk.f32.mxu1 %vm1632_vm5, %v1633_v30 }
 0x31a   : > { %1509 = vmatmul.mubr.f32.vlgmr.msra.gmra.mrb[0].mxu1 %v894_v8 }
 0x3ed   : > { %v1282_v13 = vpop.f32.mrb[0].mxu1 }
 0x3ee   : > { %1286 = vst.msk [vmem:[#allocation2] sm:$0xff] %vm344_vm2, %v1282_v13  ;;  %v1510_v14 = vpop.f32.mrb[1].mxu1 }
 0x3ef   : > { %1287 = vst.msk [vmem:[%s1693_s8] sm:$0xff] %vm346_vm3, %v1282_v13 }
 0x3f0 PF: > { %s16_s23 = sadd.s32 1, %s1625_s23   ;;  %s1777_s21 = smov %s1621_s22 }
 0x3f1   : > { %p13_p6 = scmp.ge.s32.totalorder %s16_s23, 10   ;;  %s1778_s22 = smov %s1780_s24 }
 0x3f3   :  { %15 = sbr.rel (!%p13_p6) target bundleno = 2 (0x2), region = 81 }

</bundles_post_ra>
